<compile_context>
chip_gen: v7x
topology: tpu7x:2x2x1
jax: 0.10.0
libtpu: 0.0.40
codegen_flags: <defaults>
</compile_context>

<pallas_src>
import functools

import numpy as np
import jax
import jax.numpy as jnp
from jax.experimental import pallas as pl
from jax.experimental.pallas import tpu as pltpu

EPS = 1e-5  # PyTorch InstanceNorm2d default


def _conv_block_kernel(x_ref, w_ref, mask_ref, o_ref, *,
                       ksz: int, h: int, w: int, wp: int, relu_type: str):
    """Fused reflect-pad conv + InstanceNorm + ReLU for ONE batch element.

    x_ref:    (1, C_in, L)        flat reflect-padded image (bf16), L >= shift_max + H*Wp
    w_ref:    (K*K, C_out, C_in)  per-tap conv weights (bf16), w_ref[ky*K+kx] = W[:,:,ky,kx]
    mask_ref: (1, H*Wp)           f32 {0,1} mask of valid (non-pad) output columns
    o_ref:    (1, C_out, H*Wp)    f32 output (pad columns are garbage, dropped by wrapper)
    """
    hwo = h * wp
    inv_hw = 1.0 / (h * w)
    c_out = w_ref.shape[1]

    x = x_ref[0]           # (C_in, L)         bf16
    wt = w_ref[...]        # (K*K, C_out, C_in) bf16
    m = mask_ref[...]      # (1, H*Wp)          f32

    # Conv as K*K shifted-slice matmuls, accumulated in f32 (whole (C_out, H*Wp)
    # accumulator is only ~9 vregs, so it lives in registers).
    acc = jnp.zeros((c_out, hwo), jnp.float32)
    for ky in range(ksz):
        for kx in range(ksz):
            shift = ky * wp + kx
            rhs = x[:, shift:shift + hwo]                     # (C_in, H*Wp) bf16
            acc = acc + jnp.dot(wt[ky * ksz + kx], rhs,
                                preferred_element_type=jnp.float32)

    # InstanceNorm2d (no affine): per-channel stats over valid spatial columns only,
    # centered two-pass variance (avoids E[y^2]-E[y]^2 cancellation).
    mean = jnp.sum(acc * m, axis=1, keepdims=True) * inv_hw   # (C_out, 1)
    yc = acc - mean
    var = jnp.sum(yc * yc * m, axis=1, keepdims=True) * inv_hw
    y = yc * jax.lax.rsqrt(var + EPS)

    if relu_type == "relu":
        y = jnp.maximum(y, 0.0)
    elif relu_type == "leakyrelu":
        y = jnp.where(y > 0.0, y, 0.2 * y)

    o_ref[0] = y.astype(o_ref.dtype)


@functools.partial(jax.jit, static_argnames=("ksz", "relu_type"))
def conv_block_forward(x, weight, bias=None, *, ksz=3, relu_type="relu"):
    """ConvBlock forward.  x: (N, C_in, H, W) f32 -> (N, C_out, H, W) f32.

    `bias` is accepted for API parity but intentionally unused: under non-affine
    InstanceNorm2d a per-channel conv bias is a mathematical no-op.
    """
    del bias  # cancelled exactly by the instance-norm mean subtraction
    assert ksz % 2 == 1, "reflect-padding path implemented for odd kernel sizes only"
    n, c_in, h, w = x.shape
    c_out = weight.shape[0]
    p = (ksz - 1) // 2
    hp, wp = h + 2 * p, w + 2 * p
    hwo = h * wp                                   # output columns incl. pad garbage
    shift_max = (ksz - 1) * wp + (ksz - 1)
    l = ((shift_max + hwo + 127) // 128) * 128     # lane-multiple flat image length

    # Reflect-pad, flatten row-major, zero-pad tail to L, cast matmul operand to bf16.
    xp = jnp.pad(x.astype(jnp.bfloat16), ((0, 0), (0, 0), (p, p), (p, p)),
                 mode="reflect")                               # (N, C_in, Hp, Wp)
    xflat = jnp.pad(xp.reshape(n, c_in, hp * wp),
                    ((0, 0), (0, 0), (0, l - hp * wp)))        # (N, C_in, L)

    # (C_out, C_in, K, K) -> (K*K, C_out, C_in) so w_taps[ky*K+kx] == weight[:, :, ky, kx].
    w_taps = jnp.transpose(weight, (2, 3, 0, 1)).reshape(ksz * ksz, c_out, c_in)
    w_taps = w_taps.astype(jnp.bfloat16)

    # Compile-time-constant {0,1} mask of valid output columns (w < W in each Wp-row).
    mask = jnp.asarray(((np.arange(hwo) % wp) < w).astype(np.float32)).reshape(1, hwo)

    kernel = functools.partial(_conv_block_kernel, ksz=ksz, h=h, w=w, wp=wp,
                               relu_type=relu_type)

    cost = pl.CostEstimate(
        flops=2 * n * c_out * c_in * ksz * ksz * h * w,
        transcendentals=n * c_out,
        bytes_accessed=(xflat.size + w_taps.size) * 2
                       + (mask.size + n * c_out * hwo) * 4,
    )

    out_flat = pl.pallas_call(
        kernel,
        out_shape=jax.ShapeDtypeStruct((n, c_out, hwo), jnp.float32),
        grid=(n,),
        in_specs=[
            pl.BlockSpec((1, c_in, l), lambda i: (i, 0, 0)),
            pl.BlockSpec((ksz * ksz, c_out, c_in), lambda i: (0, 0, 0)),
            pl.BlockSpec((1, hwo), lambda i: (0, 0)),
        ],
        out_specs=pl.BlockSpec((1, c_out, hwo), lambda i: (i, 0, 0)),
        compiler_params=pltpu.CompilerParams(dimension_semantics=("parallel",)),
        cost_estimate=cost,
    )(xflat, w_taps, mask)

    # Drop the per-row pad columns: (N, C_out, H*Wp) -> (N, C_out, H, W).
    return out_flat.reshape(n, c_out, h, wp)[:, :, :, :w]


def conv_block_reference(x, weight, bias, *, ksz=3, relu_type="relu"):
    """Pure-JAX f32 reference matching PyTorch semantics (bias included)."""
    p = (ksz - 1) // 2
    xp = jnp.pad(x, ((0, 0), (0, 0), (p, p), (p, p)), mode="reflect")
    y = jax.lax.conv_general_dilated(
        xp, weight, window_strides=(1, 1), padding="VALID",
        dimension_numbers=("NCHW", "OIHW", "NCHW"))
    y = y + bias.reshape(1, -1, 1, 1)
    mean = y.mean(axis=(2, 3), keepdims=True)
    var = ((y - mean) ** 2).mean(axis=(2, 3), keepdims=True)
    y = (y - mean) * jax.lax.rsqrt(var + EPS)
    if relu_type == "relu":
        y = jnp.maximum(y, 0.0)
    elif relu_type == "leakyrelu":
        y = jnp.where(y > 0.0, y, 0.2 * y)
    return y


if __name__ == "__main__":
    # Small shapes consistent with the module: N=2, C_in=4, C_out=8, H=W=16, K=3.
    N, C_IN, C_OUT, H, W, K = 2, 4, 8, 16, 16, 3

    key = jax.random.PRNGKey(0)
    k_x, k_w, k_b = jax.random.split(key, 3)

    x = jax.random.normal(k_x, (N, C_IN, H, W), dtype=jnp.float32)

    # Deterministic Conv2d-style init (uniform(-bound, bound), bound = 1/sqrt(fan_in)).
    fan_in = C_IN * K * K
    bound = 1.0 / (fan_in ** 0.5)
    weight = jax.random.uniform(k_w, (C_OUT, C_IN, K, K), jnp.float32, -bound, bound)
    bias = jax.random.uniform(k_b, (C_OUT,), jnp.float32, -bound, bound)

    ref = conv_block_reference(x, weight, bias, ksz=K, relu_type="relu")

    out = conv_block_forward(x, weight, bias, ksz=K, relu_type="relu")
    out = jax.block_until_ready(out)
    assert out.shape == (N, C_OUT, H, W)
    # bf16 matmul operands -> slightly loosened tolerance vs the f32 reference.
    assert jnp.allclose(out, ref, atol=3e-2, rtol=3e-2), "mismatch vs reference"

    print("KERNEL_OK")
</pallas_src>

<mosaic_0001>
module attributes {stable_mosaic.version = 11 : i64} {
  func.func @_conv_block_kernel(%arg0: i32, %arg1: memref<1x4x384xbf16, #tpu.memory_space<vmem>>, %arg2: memref<9x8x4xbf16, #tpu.memory_space<vmem>>, %arg3: memref<1x288xf32, #tpu.memory_space<vmem>>, %arg4: memref<1x8x288xf32, #tpu.memory_space<vmem>>) attributes {dimension_semantics = [#tpu.dimension_semantics<parallel>], iteration_bounds = array<i64: 2>, scalar_prefetch = 0 : i64, scratch_operands = 0 : i64, tpu.core_type = #tpu.core_type<tc>, window_params = [{transform_indices = @transform_0, window_bounds = array<i64: 1, 4, 384>}, {pipeline_mode = #tpu.pipeline_mode<synchronous>, transform_indices = @transform_1, window_bounds = array<i64: 9, 8, 4>}, {pipeline_mode = #tpu.pipeline_mode<synchronous>, transform_indices = @transform_2, window_bounds = array<i64: 1, 288>}, {transform_indices = @transform_3, window_bounds = array<i64: 1, 8, 288>}]} {
    %c0 = arith.constant 0 : index
    %c0_0 = arith.constant 0 : index
    %c0_1 = arith.constant 0 : index
    %0 = vector.load %arg1[%c0, %c0_0, %c0_1] : memref<1x4x384xbf16, #tpu.memory_space<vmem>>, vector<1x4x384xbf16>
    %1 = vector.shape_cast %0 : vector<1x4x384xbf16> to vector<4x384xbf16>
    %c0_2 = arith.constant 0 : index
    %c0_3 = arith.constant 0 : index
    %c0_4 = arith.constant 0 : index
    %2 = vector.load %arg2[%c0_2, %c0_3, %c0_4] : memref<9x8x4xbf16, #tpu.memory_space<vmem>>, vector<9x8x4xbf16>
    %c0_5 = arith.constant 0 : index
    %c0_6 = arith.constant 0 : index
    %3 = vector.load %arg3[%c0_5, %c0_6] : memref<1x288xf32, #tpu.memory_space<vmem>>, vector<1x288xf32>
    %cst = arith.constant 0.000000e+00 : f32
    %4 = vector.broadcast %cst : f32 to vector<8x288xf32>
    %5 = vector.extract_strided_slice %1 {offsets = [0, 0], sizes = [4, 288], strides = [1, 1]} : vector<4x384xbf16> to vector<4x288xbf16>
    %6 = vector.extract_strided_slice %2 {offsets = [0, 0, 0], sizes = [1, 8, 4], strides = [1, 1, 1]} : vector<9x8x4xbf16> to vector<1x8x4xbf16>
    %7 = vector.shape_cast %6 : vector<1x8x4xbf16> to vector<8x4xbf16>
    %cst_7 = arith.constant dense<0.000000e+00> : vector<8x288xf32>
    %8 = tpu.matmul %7, %5, %cst_7 {dimension_numbers = #tpu.dot_dimension_numbers<[1], [0], [0], [1], [0, 0, 1, 1], [], []>} : vector<8x4xbf16>, vector<4x288xbf16>, vector<8x288xf32> -> vector<8x288xf32>
    %9 = arith.addf %4, %8 : vector<8x288xf32>
    %10 = vector.extract_strided_slice %1 {offsets = [0, 1], sizes = [4, 288], strides = [1, 1]} : vector<4x384xbf16> to vector<4x288xbf16>
    %11 = vector.extract_strided_slice %2 {offsets = [1, 0, 0], sizes = [1, 8, 4], strides = [1, 1, 1]} : vector<9x8x4xbf16> to vector<1x8x4xbf16>
    %12 = vector.shape_cast %11 : vector<1x8x4xbf16> to vector<8x4xbf16>
    %cst_8 = arith.constant dense<0.000000e+00> : vector<8x288xf32>
    %13 = tpu.matmul %12, %10, %cst_8 {dimension_numbers = #tpu.dot_dimension_numbers<[1], [0], [0], [1], [0, 0, 1, 1], [], []>} : vector<8x4xbf16>, vector<4x288xbf16>, vector<8x288xf32> -> vector<8x288xf32>
    %14 = arith.addf %9, %13 : vector<8x288xf32>
    %15 = vector.extract_strided_slice %1 {offsets = [0, 2], sizes = [4, 288], strides = [1, 1]} : vector<4x384xbf16> to vector<4x288xbf16>
    %16 = vector.extract_strided_slice %2 {offsets = [2, 0, 0], sizes = [1, 8, 4], strides = [1, 1, 1]} : vector<9x8x4xbf16> to vector<1x8x4xbf16>
    %17 = vector.shape_cast %16 : vector<1x8x4xbf16> to vector<8x4xbf16>
    %cst_9 = arith.constant dense<0.000000e+00> : vector<8x288xf32>
    %18 = tpu.matmul %17, %15, %cst_9 {dimension_numbers = #tpu.dot_dimension_numbers<[1], [0], [0], [1], [0, 0, 1, 1], [], []>} : vector<8x4xbf16>, vector<4x288xbf16>, vector<8x288xf32> -> vector<8x288xf32>
    %19 = arith.addf %14, %18 : vector<8x288xf32>
    %20 = vector.extract_strided_slice %1 {offsets = [0, 18], sizes = [4, 288], strides = [1, 1]} : vector<4x384xbf16> to vector<4x288xbf16>
    %21 = vector.extract_strided_slice %2 {offsets = [3, 0, 0], sizes = [1, 8, 4], strides = [1, 1, 1]} : vector<9x8x4xbf16> to vector<1x8x4xbf16>
    %22 = vector.shape_cast %21 : vector<1x8x4xbf16> to vector<8x4xbf16>
    %cst_10 = arith.constant dense<0.000000e+00> : vector<8x288xf32>
    %23 = tpu.matmul %22, %20, %cst_10 {dimension_numbers = #tpu.dot_dimension_numbers<[1], [0], [0], [1], [0, 0, 1, 1], [], []>} : vector<8x4xbf16>, vector<4x288xbf16>, vector<8x288xf32> -> vector<8x288xf32>
    %24 = arith.addf %19, %23 : vector<8x288xf32>
    %25 = vector.extract_strided_slice %1 {offsets = [0, 19], sizes = [4, 288], strides = [1, 1]} : vector<4x384xbf16> to vector<4x288xbf16>
    %26 = vector.extract_strided_slice %2 {offsets = [4, 0, 0], sizes = [1, 8, 4], strides = [1, 1, 1]} : vector<9x8x4xbf16> to vector<1x8x4xbf16>
    %27 = vector.shape_cast %26 : vector<1x8x4xbf16> to vector<8x4xbf16>
    %cst_11 = arith.constant dense<0.000000e+00> : vector<8x288xf32>
    %28 = tpu.matmul %27, %25, %cst_11 {dimension_numbers = #tpu.dot_dimension_numbers<[1], [0], [0], [1], [0, 0, 1, 1], [], []>} : vector<8x4xbf16>, vector<4x288xbf16>, vector<8x288xf32> -> vector<8x288xf32>
    %29 = arith.addf %24, %28 : vector<8x288xf32>
    %30 = vector.extract_strided_slice %1 {offsets = [0, 20], sizes = [4, 288], strides = [1, 1]} : vector<4x384xbf16> to vector<4x288xbf16>
    %31 = vector.extract_strided_slice %2 {offsets = [5, 0, 0], sizes = [1, 8, 4], strides = [1, 1, 1]} : vector<9x8x4xbf16> to vector<1x8x4xbf16>
    %32 = vector.shape_cast %31 : vector<1x8x4xbf16> to vector<8x4xbf16>
    %cst_12 = arith.constant dense<0.000000e+00> : vector<8x288xf32>
    %33 = tpu.matmul %32, %30, %cst_12 {dimension_numbers = #tpu.dot_dimension_numbers<[1], [0], [0], [1], [0, 0, 1, 1], [], []>} : vector<8x4xbf16>, vector<4x288xbf16>, vector<8x288xf32> -> vector<8x288xf32>
    %34 = arith.addf %29, %33 : vector<8x288xf32>
    %35 = vector.extract_strided_slice %1 {offsets = [0, 36], sizes = [4, 288], strides = [1, 1]} : vector<4x384xbf16> to vector<4x288xbf16>
    %36 = vector.extract_strided_slice %2 {offsets = [6, 0, 0], sizes = [1, 8, 4], strides = [1, 1, 1]} : vector<9x8x4xbf16> to vector<1x8x4xbf16>
    %37 = vector.shape_cast %36 : vector<1x8x4xbf16> to vector<8x4xbf16>
    %cst_13 = arith.constant dense<0.000000e+00> : vector<8x288xf32>
    %38 = tpu.matmul %37, %35, %cst_13 {dimension_numbers = #tpu.dot_dimension_numbers<[1], [0], [0], [1], [0, 0, 1, 1], [], []>} : vector<8x4xbf16>, vector<4x288xbf16>, vector<8x288xf32> -> vector<8x288xf32>
    %39 = arith.addf %34, %38 : vector<8x288xf32>
    %40 = vector.extract_strided_slice %1 {offsets = [0, 37], sizes = [4, 288], strides = [1, 1]} : vector<4x384xbf16> to vector<4x288xbf16>
    %41 = vector.extract_strided_slice %2 {offsets = [7, 0, 0], sizes = [1, 8, 4], strides = [1, 1, 1]} : vector<9x8x4xbf16> to vector<1x8x4xbf16>
    %42 = vector.shape_cast %41 : vector<1x8x4xbf16> to vector<8x4xbf16>
    %cst_14 = arith.constant dense<0.000000e+00> : vector<8x288xf32>
    %43 = tpu.matmul %42, %40, %cst_14 {dimension_numbers = #tpu.dot_dimension_numbers<[1], [0], [0], [1], [0, 0, 1, 1], [], []>} : vector<8x4xbf16>, vector<4x288xbf16>, vector<8x288xf32> -> vector<8x288xf32>
    %44 = arith.addf %39, %43 : vector<8x288xf32>
    %45 = vector.extract_strided_slice %1 {offsets = [0, 38], sizes = [4, 288], strides = [1, 1]} : vector<4x384xbf16> to vector<4x288xbf16>
    %46 = vector.extract_strided_slice %2 {offsets = [8, 0, 0], sizes = [1, 8, 4], strides = [1, 1, 1]} : vector<9x8x4xbf16> to vector<1x8x4xbf16>
    %47 = vector.shape_cast %46 : vector<1x8x4xbf16> to vector<8x4xbf16>
    %cst_15 = arith.constant dense<0.000000e+00> : vector<8x288xf32>
    %48 = tpu.matmul %47, %45, %cst_15 {dimension_numbers = #tpu.dot_dimension_numbers<[1], [0], [0], [1], [0, 0, 1, 1], [], []>} : vector<8x4xbf16>, vector<4x288xbf16>, vector<8x288xf32> -> vector<8x288xf32>
    %49 = arith.addf %44, %48 : vector<8x288xf32>
    %50 = vector.broadcast %3 : vector<1x288xf32> to vector<8x288xf32>
    %51 = arith.mulf %49, %50 : vector<8x288xf32>
    %cst_16 = arith.constant dense<0.000000e+00> : vector<8xf32>
    %52 = vector.multi_reduction <add>, %51, %cst_16 [1] : vector<8x288xf32> to vector<8xf32>
    %53 = vector.shape_cast %52 : vector<8xf32> to vector<8x1xf32>
    %cst_17 = arith.constant 3.906250e-03 : f32
    %54 = vector.broadcast %cst_17 : f32 to vector<8x1xf32>
    %55 = arith.mulf %53, %54 : vector<8x1xf32>
    %56 = vector.broadcast %55 : vector<8x1xf32> to vector<8x288xf32>
    %57 = arith.subf %49, %56 : vector<8x288xf32>
    %58 = arith.mulf %57, %57 : vector<8x288xf32>
    %59 = vector.broadcast %3 : vector<1x288xf32> to vector<8x288xf32>
    %60 = arith.mulf %58, %59 : vector<8x288xf32>
    %cst_18 = arith.constant dense<0.000000e+00> : vector<8xf32>
    %61 = vector.multi_reduction <add>, %60, %cst_18 [1] : vector<8x288xf32> to vector<8xf32>
    %62 = vector.shape_cast %61 : vector<8xf32> to vector<8x1xf32>
    %cst_19 = arith.constant 3.906250e-03 : f32
    %63 = vector.broadcast %cst_19 : f32 to vector<8x1xf32>
    %64 = arith.mulf %62, %63 : vector<8x1xf32>
    %cst_20 = arith.constant 9.99999974E-6 : f32
    %65 = vector.broadcast %cst_20 : f32 to vector<8x1xf32>
    %66 = arith.addf %64, %65 : vector<8x1xf32>
    %67 = math.rsqrt %66 : vector<8x1xf32>
    %68 = vector.broadcast %67 : vector<8x1xf32> to vector<8x288xf32>
    %69 = arith.mulf %57, %68 : vector<8x288xf32>
    %cst_21 = arith.constant 0.000000e+00 : f32
    %70 = vector.broadcast %cst_21 : f32 to vector<8x288xf32>
    %71 = arith.maximumf %69, %70 : vector<8x288xf32>
    %c0_22 = arith.constant 0 : index
    %c0_23 = arith.constant 0 : index
    %c0_24 = arith.constant 0 : index
    %72 = vector.load %arg4[%c0_22, %c0_23, %c0_24] : memref<1x8x288xf32, #tpu.memory_space<vmem>>, vector<1x8x288xf32>
    %73 = vector.shape_cast %72 : vector<1x8x288xf32> to vector<8x288xf32>
    %74 = vector.shape_cast %71 : vector<8x288xf32> to vector<1x8x288xf32>
    tpu.vector_store %arg4[%c0_22, %c0_23, %c0_24], %74 {strides = array<i32>} : memref<1x8x288xf32, #tpu.memory_space<vmem>>, vector<1x8x288xf32>,
    return
  }
  func.func @transform_0(%arg0: i32) -> (i32, i32, i32) {
    %c0_i32 = arith.constant 0 : i32
    %c0_i32_0 = arith.constant 0 : i32
    %c0_i32_1 = arith.constant 0 : i32
    return %arg0, %c0_i32, %c0_i32_0 : i32, i32, i32
  }
  func.func @transform_1(%arg0: i32) -> (i32, i32, i32) {
    %c0_i32 = arith.constant 0 : i32
    %c0_i32_0 = arith.constant 0 : i32
    %c0_i32_1 = arith.constant 0 : i32
    %c0_i32_2 = arith.constant 0 : i32
    return %c0_i32, %c0_i32_0, %c0_i32_1 : i32, i32, i32
  }
  func.func @transform_2(%arg0: i32) -> (i32, i32) {
    %c0_i32 = arith.constant 0 : i32
    %c0_i32_0 = arith.constant 0 : i32
    %c0_i32_1 = arith.constant 0 : i32
    return %c0_i32, %c0_i32_0 : i32, i32
  }
  func.func @transform_3(%arg0: i32) -> (i32, i32, i32) {
    %c0_i32 = arith.constant 0 : i32
    %c0_i32_0 = arith.constant 0 : i32
    %c0_i32_1 = arith.constant 0 : i32
    return %arg0, %c0_i32, %c0_i32_0 : i32, i32, i32
  }
}

</mosaic_0001>

<bundles_post_ra>
// kernel: conv_block_forward.1
= control target key start
LH: loop header
LB: loop body
LE: loop exit
PB: predicated region body
PF: predicated region fallthrough
CT: control target
= control target key end

     0   :  { %s1476_s12 = smov 0   ;;  %s1617_s0 = inlined_call_operand.vmem [shape: bf16[2,4,384], index: 0, kind: input, shape index: {}]   ;;  %s1618_s1 = inlined_call_operand.vmem [shape: bf16[9,8,4], index: 1, kind: input, shape index: {}]   ;;  %s1619_s2 = inlined_call_operand.vmem [shape: f32[1,288], index: 2, kind: input, shape index: {}]   ;;  %s1620_s3 = inlined_call_operand.vmem [shape: f32[2,8,288], index: 3, kind: output, shape index: {}]  }
   0x1 LB: > { %s1239_s13 = sadd.s32 4294967295, %s1442_s12   ;;  %p1243_p0 = scmp.ge.s32.totalorder %s1442_s12, 1  ;;  %s1442_s12 = sphi %s1476_s12, %s13_s12  }
   0x2   : > { %p137_p1 = scmp.lt.s32.totalorder %s1442_s12, 3 }
   0x4   : > { %p138_p2 = pnand %p1243_p0, %p137_p1 }
   0x5   : > { %p161_p3 = scmp.lt.s32.totalorder (!%p138_p2), %s1239_s13, 1  ;;  %v188_v0 = vlaneseq (!%p138_p2)  ;;  %v1444_v1 = vmov (!%p138_p2), 1983009808   ;;  %v1445_v3 = vmov (!%p138_p2), 0.0   ;;  %vm1446_vm0 = vmmov (!%p138_p2), 0   ;;  %s1448_s18 = smov (!%p138_p2), 127  }
   0x6   : > { %141 = sbr.rel (%p138_p2) target bundleno = 776 (0x308), region = 32  ;;  %v186_v2 = vunpack.c.l.s4 (!%p138_p2), %v1444_v1  ;;  %1293 = vmatprep.subr.bf16.mxu1 (!%p138_p2), %v1445_v3  ;;  %1295 = vmatprep.mubr.msk.bf16.mxu1 (!%p138_p2), %vm1446_vm0, %v1445_v3  ;;  %v1447_v6 = vmov (!%p138_p2), 0   ;;  %s1449_s19 = smov (!%p138_p2), 126   ;;  %vm213_vm1 = vcmask (!%p138_p2), 1041408   ;;  %vm206_vm2 = vcmask (!%p138_p2), 1039360  }
   0x7   : > { %v1487_v4 = vshrl.u32 (!%p138_p2), %v188_v0, 7  ;;  %255 = vmatprep.mubr.bf16.mxu0 (!%p138_p2), %v1447_v6  ;;  %s1450_s20 = smov (!%p138_p2), 110   ;;  %s1451_s21 = smov (!%p138_p2), 109   ;;  %v174_v17 = vld [vmem:[%s1618_s1 + $0x4] sm:$0xf] (!%p138_p2)  ;;  %vm209_vm3 = vcmask (!%p138_p2), 31744  }
   0x8   : > { %v187_v5 = vunpack.c.0.s8 (!%p138_p2), %v186_v2  ;;  %s1452_s22 = smov (!%p138_p2), 108   ;;  %s1453_s23 = smov (!%p138_p2), 92   ;;  %vm403_vm4 = vcmask (!%p138_p2), 1031168   ;;  %v173_v28 = vld [vmem:[%s1618_s1] sm:$0xf] (!%p138_p2)  ;;  %vm508_vm5 = vcmask (!%p138_p2), 900096  }
   0x9   : > { %s1454_s24 = smov (!%p138_p2), 91   ;;  %s1455_s25 = smov (!%p138_p2), 90   ;;  %v175_v36 = vld [vmem:[%s1618_s1 + $0x8] sm:$0xf] (!%p138_p2)  ;;  %vm613_vm6 = vcmask (!%p138_p2), 891904   ;;  %vm718_vm7 = vcmask (!%p138_p2), 883712  }
   0xa   : > { %v190_v7 = vsub.s32 (!%p138_p2), %v187_v5, %v1487_v4  ;;  %v176_v44 = vld [vmem:[%s1618_s1 + $0xc] sm:$0xf] (!%p138_p2)  ;;  %v177_v52 = vld [vmem:[%s1618_s1 + $0x10] sm:$0xf] (!%p138_p2)  ;;  %vm823_vm8 = vcmask (!%p138_p2), 752640   ;;  %vm928_vm9 = vcmask (!%p138_p2), 744448  }
   0xb   : > { %v178_v60 = vld [vmem:[%s1618_s1 + $0x14] sm:$0xf] (!%p138_p2)  ;;  %vm1033_vm10 = vcmask (!%p138_p2), 736256   ;;  %vm1152_vm11 = vcmask (!%p138_p2), 261120  }
   0xd   : > { %s1622_s13 = smov (!%p161_p3, %s1239_s13), 1 }
   0xe   : > { %s1411_s14 = smul.u32 6, %s1622_s13 }
  0x10   : > { %s165_s17 = scalar_lea.vmem %s1617_s0, %s1411_s14 }
  0x11   : > { %v172_v8 = vld [vmem:[%s165_s17] sm:$0x3f] }
  0x12   : > { %v191_v9 = vrot.slane %v172_v8, %v190_v7  ;;  %v184_v10 = vcombine.high %v172_v8, %v172_v8 }
  0x14   : > { %200 = vrot.lane.b32.xlu0 %v191_v9, %s1448_s18  ;;  %v198_v11 = vrot.slane %v184_v10, %v190_v7  ;;  %v199_v12 = vcombine.high %v191_v9, %v191_v9  ;;  %v308_v23 = vsel %vm213_vm1, %v191_v9, 0  ;;  %v179_v7 = vld [vmem:[%s1618_s1 + $0x18] sm:$0xf] }
  0x16   : > { %204 = vrot.lane.b32.xlu1 %v198_v11, %s1448_s18  ;;  %v314_v20 = vsel %vm213_vm1, %v198_v11, 0 }
  0x18   : > { %202 = vrot.lane.b32.xlu0 %v199_v12, %s1448_s18 }
  0x1a   : > { %397 = vrot.lane.b32.xlu1 %v191_v9, %s1449_s19 }
  0x1c   : > { %399 = vrot.lane.b32.xlu0 %v199_v12, %s1449_s19 }
  0x1e   : > { %401 = vrot.lane.b32.xlu1 %v198_v11, %s1449_s19 }
  0x20   : > { %502 = vrot.lane.b32.xlu0 %v191_v9, %s1450_s20 }
  0x22   : > { %504 = vrot.lane.b32.xlu1 %v199_v12, %s1450_s20 }
  0x24   : > { %506 = vrot.lane.b32.xlu0 %v198_v11, %s1450_s20 }
  0x26   : > { %607 = vrot.lane.b32.xlu1 %v191_v9, %s1451_s21 }
  0x28   : > { %609 = vrot.lane.b32.xlu0 %v199_v12, %s1451_s21 }
  0x2a   : > { %611 = vrot.lane.b32.xlu1 %v198_v11, %s1451_s21  ;;  %s1412_s21 = smul.u32 24, %s1622_s13 }
  0x2c   : > { %712 = vrot.lane.b32.xlu0 %v191_v9, %s1452_s22 }
  0x2e   : > { %714 = vrot.lane.b32.xlu1 %v199_v12, %s1452_s22 }
  0x30   : > { %716 = vrot.lane.b32.xlu0 %v198_v11, %s1452_s22 }
  0x32   : > { %817 = vrot.lane.b32.xlu1 %v191_v9, %s1453_s23 }
  0x34   : > { %819 = vrot.lane.b32.xlu0 %v199_v12, %s1453_s23 }
  0x36   : > { %821 = vrot.lane.b32.xlu1 %v198_v11, %s1453_s23 }
  0x38   : > { %922 = vrot.lane.b32.xlu0 %v191_v9, %s1454_s24 }
  0x3a   : > { %924 = vrot.lane.b32.xlu1 %v199_v12, %s1454_s24 }
  0x3c   : > { %926 = vrot.lane.b32.xlu0 %v198_v11, %s1454_s24  ;;  %s170_s24 = scalar_lea.vmem %s1620_s3, %s1412_s21 }
  0x3e   : > { %1027 = vrot.lane.b32.xlu1 %v191_v9, %s1455_s25 }
  0x40   : > { %1029 = vrot.lane.b32.xlu0 %v199_v12, %s1455_s25 }
  0x42   : > { %1031 = vrot.lane.b32.xlu1 %v198_v11, %s1455_s25 }
  0x86   : > { %v201_v13 = vpop.permute.xlu0 %200 }
  0x88   : > { %v205_v14 = vpop.permute.xlu1 %204 }
  0x89   : > { %v221_v15 = vsel %vm213_vm1, %v205_v14, 0 }
  0x8a   : > { %v203_v16 = vpop.permute.xlu0 %202  ;;  %1294 = vmatpush3.bf16.msra.mxu1 %v221_v15 }
  0x8b   : > { %v208_v18 = vsel %vm206_vm2, %v203_v16, %v205_v14  ;;  %v207_v19 = vsel %vm206_vm2, %v201_v13, %v203_v16  ;;  %1299 = vmatprep.subr.bf16.mxu1 %v1445_v3  ;;  %v180_v14 = vld [vmem:[%s1618_s1 + $0x1c] sm:$0xf] }
  0x8c   : > { %1246 = vmatprep.subr.msk.bf16.mxu0 %vm213_vm1, %v208_v18  ;;  %v215_v21 = vsel %vm213_vm1, %v207_v19, 0  ;;  %v398_v22 = vpop.permute.xlu1 %397  ;;  %v181_v18 = vld [vmem:[%s1618_s1 + $0x20] sm:$0xf]  ;;  %v1143_v19 = vsub.s32 2, %v1487_v4 }
  0x8d   : > { %224 = vmatpush1.bf16.msra.mxu0 %v215_v21  ;;  %1296 = vmatmul.mubr.msk.bf16.vlgmr.msra.gmra.mrb[0].mxu1 %vm209_vm3, %v174_v17  ;;  %v1139_v21 = vsub.s32 1, %v1487_v4 }
  0x8e   : > { %1249 = vmatprep.subr.msk.bf16.mxu0 %vm213_vm1, %v199_v12  ;;  %1300 = vmatpush3.bf16.msra.mxu1 %v314_v20  ;;  %v400_v24 = vpop.permute.xlu0 %399  ;;  %v1135_v20 = vsub.s32 0, %v1487_v4 }
  0x8f   : > { %1301 = vmatprep.mubr.msk.bf16.mxu1 %vm1446_vm0, %v1445_v3  ;;  %1305 = vmatprep.subr.bf16.mxu1 %v1445_v3  ;;  %v404_v29 = vsel %vm403_vm4, %v398_v22, %v400_v24 }
  0x90   : > { %1247 = vmatmul.mubr.msk.bf16.vlgmr.msra.gmra.mrb[0].mxu0 %vm209_vm3, %v174_v17  ;;  %v402_v25 = vpop.permute.xlu1 %401  ;;  %v410_v33 = vsel %vm213_vm1, %v404_v29, 0 }
  0x91   : > { %317 = vmatpush1.bf16.msra.mxu0 %v308_v23  ;;  %v405_v26 = vsel %vm403_vm4, %v400_v24, %v402_v25  ;;  %348 = vmatprep.mubr.bf16.mxu0 %v1447_v6  ;;  %v416_v30 = vsel %vm213_vm1, %v402_v25, 0 }
  0x92   : > { %1252 = vmatprep.subr.msk.bf16.mxu0 %vm213_vm1, %v405_v26  ;;  %v503_v27 = vpop.permute.xlu0 %502 }
  0x94   : > { %v505_v31 = vpop.permute.xlu1 %504 }
  0x95   : > { %v509_v37 = vsel %vm508_vm5, %v503_v27, %v505_v31 }
  0x96   : > { %v507_v32 = vpop.permute.xlu0 %506  ;;  %v515_v41 = vsel %vm213_vm1, %v509_v37, 0 }
  0x97   : > { %v510_v34 = vsel %vm508_vm5, %v505_v31, %v507_v32  ;;  %v521_v38 = vsel %vm213_vm1, %v507_v32, 0 }
  0x98   : > { %v608_v35 = vpop.permute.xlu1 %607 }
  0x99   : > { %1302 = vmatmul.mubr.msk.bf16.vlgmr.msra.gmra.mrb[0].mxu1 %vm209_vm3, %v173_v28 }
  0x9a   : > { %1306 = vmatpush3.bf16.msra.mxu1 %v416_v30  ;;  %1307 = vmatprep.mubr.msk.bf16.mxu1 %vm1446_vm0, %v1445_v3  ;;  %v610_v39 = vpop.permute.xlu0 %609 }
  0x9b   : > { %1311 = vmatprep.subr.bf16.mxu1 %v1445_v3  ;;  %v614_v45 = vsel %vm613_vm6, %v608_v35, %v610_v39 }
  0x9c   : > { %1250 = vmatmul.mubr.msk.bf16.vlgmr.msra.gmra.mrb[0].mxu0 %vm209_vm3, %v173_v28  ;;  %v612_v40 = vpop.permute.xlu1 %611  ;;  %v620_v49 = vsel %vm213_vm1, %v614_v45, 0 }
  0x9d   : > { %419 = vmatpush1.bf16.msra.mxu0 %v410_v33  ;;  %450 = vmatprep.mubr.bf16.mxu0 %v1447_v6  ;;  %v615_v42 = vsel %vm613_vm6, %v610_v39, %v612_v40  ;;  %v626_v46 = vsel %vm213_vm1, %v612_v40, 0 }
  0x9e   : > { %1255 = vmatprep.subr.msk.bf16.mxu0 %vm213_vm1, %v510_v34  ;;  %v713_v43 = vpop.permute.xlu0 %712 }
  0xa0   : > { %v715_v47 = vpop.permute.xlu1 %714 }
  0xa1   : > { %v719_v53 = vsel %vm718_vm7, %v713_v43, %v715_v47 }
  0xa2   : > { %v717_v48 = vpop.permute.xlu0 %716  ;;  %v725_v57 = vsel %vm213_vm1, %v719_v53, 0 }
  0xa3   : > { %v720_v50 = vsel %vm718_vm7, %v715_v47, %v717_v48  ;;  %v731_v54 = vsel %vm213_vm1, %v717_v48, 0 }
  0xa4   : > { %v818_v51 = vpop.permute.xlu1 %817 }
  0xa5   : > { %1308 = vmatmul.mubr.msk.bf16.vlgmr.msra.gmra.mrb[0].mxu1 %vm209_vm3, %v175_v36 }
  0xa6   : > { %1312 = vmatpush3.bf16.msra.mxu1 %v521_v38  ;;  %1313 = vmatprep.mubr.msk.bf16.mxu1 %vm1446_vm0, %v1445_v3  ;;  %v820_v55 = vpop.permute.xlu0 %819 }
  0xa7   : > { %1317 = vmatprep.subr.bf16.mxu1 %v1445_v3  ;;  %v824_v61 = vsel %vm823_vm8, %v818_v51, %v820_v55 }
  0xa8   : > { %1253 = vmatmul.mubr.msk.bf16.vlgmr.msra.gmra.mrb[0].mxu0 %vm209_vm3, %v175_v36  ;;  %v822_v56 = vpop.permute.xlu1 %821  ;;  %v830_v1 = vsel %vm213_vm1, %v824_v61, 0 }
  0xa9   : > { %524 = vmatpush1.bf16.msra.mxu0 %v515_v41  ;;  %555 = vmatprep.mubr.bf16.mxu0 %v1447_v6  ;;  %v825_v58 = vsel %vm823_vm8, %v820_v55, %v822_v56  ;;  %v836_v62 = vsel %vm213_vm1, %v822_v56, 0 }
  0xaa   : > { %1258 = vmatprep.subr.msk.bf16.mxu0 %vm213_vm1, %v615_v42  ;;  %v923_v59 = vpop.permute.xlu0 %922 }
  0xac   : > { %v925_v63 = vpop.permute.xlu1 %924 }
  0xad   : > { %v929_v8 = vsel %vm928_vm9, %v923_v59, %v925_v63 }
  0xae   : > { %v927_v0 = vpop.permute.xlu0 %926  ;;  %v935_v12 = vsel %vm213_vm1, %v929_v8, 0 }
  0xaf   : > { %v930_v2 = vsel %vm928_vm9, %v925_v63, %v927_v0  ;;  %v941_v9 = vsel %vm213_vm1, %v927_v0, 0 }
  0xb0   : > { %v1028_v5 = vpop.permute.xlu1 %1027 }
  0xb1   : > { %1314 = vmatmul.mubr.msk.bf16.vlgmr.msra.gmra.mrb[0].mxu1 %vm209_vm3, %v176_v44 }
  0xb2   : > { %1318 = vmatpush3.bf16.msra.mxu1 %v626_v46  ;;  %1319 = vmatprep.mubr.msk.bf16.mxu1 %vm1446_vm0, %v1445_v3  ;;  %v1030_v10 = vpop.permute.xlu0 %1029 }
  0xb3   : > { %1323 = vmatprep.subr.bf16.mxu1 %v1445_v3  ;;  %v1034_v15 = vsel %vm1033_vm10, %v1028_v5, %v1030_v10 }
  0xb4   : > { %1256 = vmatmul.mubr.msk.bf16.vlgmr.msra.gmra.mrb[0].mxu0 %vm209_vm3, %v176_v44  ;;  %v1032_v11 = vpop.permute.xlu1 %1031  ;;  %v1040_v17 = vsel %vm213_vm1, %v1034_v15, 0 }
  0xb5   : > { %629 = vmatpush1.bf16.msra.mxu0 %v620_v49  ;;  %660 = vmatprep.mubr.bf16.mxu0 %v1447_v6  ;;  %v1035_v13 = vsel %vm1033_vm10, %v1030_v10, %v1032_v11  ;;  %v1046_v16 = vsel %vm213_vm1, %v1032_v11, 0 }
  0xb6   : > { %1261 = vmatprep.subr.msk.bf16.mxu0 %vm213_vm1, %v720_v50 }
  0xbd   : > { %1320 = vmatmul.mubr.msk.bf16.vlgmr.msra.gmra.mrb[0].mxu1 %vm209_vm3, %v177_v52 }
  0xbe   : > { %1324 = vmatpush3.bf16.msra.mxu1 %v731_v54  ;;  %1325 = vmatprep.mubr.msk.bf16.mxu1 %vm1446_vm0, %v1445_v3 }
  0xbf   : > { %1329 = vmatprep.subr.bf16.mxu1 %v1445_v3 }
  0xc0   : > { %1259 = vmatmul.mubr.msk.bf16.vlgmr.msra.gmra.mrb[0].mxu0 %vm209_vm3, %v177_v52 }
  0xc1   : > { %734 = vmatpush1.bf16.msra.mxu0 %v725_v57  ;;  %765 = vmatprep.mubr.bf16.mxu0 %v1447_v6 }
  0xc2   : > { %1264 = vmatprep.subr.msk.bf16.mxu0 %vm213_vm1, %v825_v58 }
  0xc9   : > { %1326 = vmatmul.mubr.msk.bf16.vlgmr.msra.gmra.mrb[0].mxu1 %vm209_vm3, %v178_v60 }
  0xca   : > { %1330 = vmatpush3.bf16.msra.mxu1 %v836_v62  ;;  %1331 = vmatprep.mubr.msk.bf16.mxu1 %vm1446_vm0, %v1445_v3 }
  0xcb   : > { %1335 = vmatprep.subr.bf16.mxu1 %v1445_v3 }
  0xcc   : > { %1262 = vmatmul.mubr.msk.bf16.vlgmr.msra.gmra.mrb[0].mxu0 %vm209_vm3, %v178_v60 }
  0xcd   : > { %839 = vmatpush1.bf16.msra.mxu0 %v830_v1  ;;  %870 = vmatprep.mubr.bf16.mxu0 %v1447_v6 }
  0xce   : > { %1267 = vmatprep.subr.msk.bf16.mxu0 %vm213_vm1, %v930_v2 }
  0xd5   : > { %1332 = vmatmul.mubr.msk.bf16.vlgmr.msra.gmra.mrb[0].mxu1 %vm209_vm3, %v179_v7 }
  0xd6   : > { %1336 = vmatpush3.bf16.msra.mxu1 %v941_v9  ;;  %1337 = vmatprep.mubr.msk.bf16.mxu1 %vm1446_vm0, %v1445_v3 }
  0xd7   : > { %1341 = vmatprep.subr.bf16.mxu1 %v1445_v3 }
  0xd8   : > { %1265 = vmatmul.mubr.msk.bf16.vlgmr.msra.gmra.mrb[0].mxu0 %vm209_vm3, %v179_v7 }
  0xd9   : > { %944 = vmatpush1.bf16.msra.mxu0 %v935_v12  ;;  %975 = vmatprep.mubr.bf16.mxu0 %v1447_v6 }
  0xda   : > { %1270 = vmatprep.subr.msk.bf16.mxu0 %vm213_vm1, %v1035_v13 }
  0xe1   : > { %1338 = vmatmul.mubr.msk.bf16.vlgmr.msra.gmra.mrb[0].mxu1 %vm209_vm3, %v180_v14 }
  0xe2   : > { %1342 = vmatpush3.bf16.msra.mxu1 %v1046_v16  ;;  %1343 = vmatprep.mubr.msk.bf16.mxu1 %vm1446_vm0, %v1445_v3  ;;  %v182_v3 = vld [vmem:[%s1619_s2] sm:$0x7] }
  0xe3   : > { %v1136_v23 = vrot.slane %v182_v3, %v1135_v20  ;;  %v1140_v25 = vrot.slane %v182_v3, %v1139_v21 }
  0xe4   : > { %1268 = vmatmul.mubr.msk.bf16.vlgmr.msra.gmra.mrb[0].mxu0 %vm209_vm3, %v180_v14 }
  0xe5   : > { %1049 = vmatpush1.bf16.msra.mxu0 %v1040_v17  ;;  %1080 = vmatprep.mubr.bf16.mxu0 %v1447_v6  ;;  %v1144_v6 = vrot.slane %v182_v3, %v1143_v19 }
  0xed   : > { %1344 = vmatmul.mubr.msk.bf16.vlgmr.msra.gmra.mrb[0].mxu1 %vm209_vm3, %v181_v18 }
  0xf0   : > { %1271 = vmatmul.mubr.msk.bf16.vlgmr.msra.gmra.mrb[0].mxu0 %vm209_vm3, %v181_v18 }
 0x1c0   : > { %v1123_v22 = vpop.f32.mrb[0].mxu1 }
 0x1c1   : > { %v1345_v24 = vpop.f32.mrb[1].mxu1  ;;  %v1150_v29 = vmul.f32 %v1144_v6, %v1123_v22 }
 0x1c2   : > { %v1126_v26 = vpop.f32.mrb[2].mxu1 }
 0x1c3   : > { %v1082_v27 = vpop.f32.mrb[0].mxu0  ;;  %v1346_v28 = vpop.f32.mrb[3].mxu1  ;;  %v1153_v36 = vsel %vm1152_vm11, %v1150_v29, 0.0 }
 0x1c4   : > { %v1148_v30 = vmul.f32 %v1136_v23, %v1082_v27  ;;  %v1084_v31 = vpop.f32.mrb[1].mxu0 }
 0x1c5   : > { %v1149_v32 = vmul.f32 %v1140_v25, %v1084_v31  ;;  %v1086_v33 = vpop.f32.mrb[2].mxu0 }
 0x1c6   : > { %v1087_v34 = vpop.f32.mrb[3].mxu0 }
 0x1c7   : > { %v1151_v35 = vadd.f32 %v1149_v32, %v1148_v30 }
 0x1c9   : > { %v1154_v37 = vadd.f32 %v1153_v36, %v1151_v35 }
 0x1cb   : > { %1155 = vadd.xlane.f32.xlu0 %v1154_v37 }
 0x258   : > { %v1156_v4 = vpop.xlane.xlu0 %1155 }
 0x259   : > { %v1157_v38 = vmul.f32 0.00390625, %v1156_v4 }
 0x25b   : > { %v1158_v39 = vsub.f32 %v1082_v27, %v1157_v38  ;;  %v1159_v40 = vsub.f32 %v1084_v31, %v1157_v38  ;;  %v1160_v41 = vsub.f32 %v1123_v22, %v1157_v38 }
 0x25d   : > { %v1161_v42 = vmul.f32 %v1158_v39, %v1158_v39  ;;  %v1162_v43 = vmul.f32 %v1159_v40, %v1159_v40  ;;  %v1163_v44 = vmul.f32 %v1160_v41, %v1160_v41 }
 0x25f   : > { %v1164_v45 = vmul.f32 %v1161_v42, %v1136_v23  ;;  %v1165_v46 = vmul.f32 %v1162_v43, %v1140_v25  ;;  %v1166_v47 = vmul.f32 %v1163_v44, %v1144_v6 }
 0x261   : > { %v1167_v48 = vadd.f32 %v1165_v46, %v1164_v45  ;;  %v1168_v49 = vsel %vm1152_vm11, %v1166_v47, 0.0 }
 0x263   : > { %v1169_v50 = vadd.f32 %v1168_v49, %v1167_v48 }
 0x265   : > { %1170 = vadd.xlane.f32.xlu1 %v1169_v50 }
 0x2f2   : > { %v1171_v51 = vpop.xlane.xlu1 %1170 }
 0x2f3   : > { %v1172_v52 = vmul.f32 0.00390625, %v1171_v51 }
 0x2f5   : > { %v1173_v53 = vadd.f32 1e-05, %v1172_v52 }
 0x2f7   : > { %1434 = vrsqrt.f32 %v1173_v53 }
 0x301   : > { %v1435_v54 = vpop.eup %1434 }
 0x302   : > { %v1175_v55 = vmul.f32 %v1435_v54, %v1158_v39  ;;  %v1176_v56 = vmul.f32 %v1435_v54, %v1159_v40  ;;  %v1177_v57 = vmul.f32 %v1435_v54, %v1160_v41 }
 0x304   : > { %v1178_v58 = vmax.f32 %v1175_v55, 0.0  ;;  %v1179_v59 = vmax.f32 %v1176_v56, 0.0  ;;  %v1180_v60 = vmax.f32 %v1177_v57, 0.0 }
 0x306   : > { %1181 = vst [vmem:[%s170_s24] sm:$0xff] %v1178_v58  ;;  %1182 = vst [vmem:[%s170_s24 + $0x8] sm:$0xff] %v1179_v59 }
 0x307   : > { %1183 = vst.msk [vmem:[%s170_s24 + $0x10] sm:$0xff] %vm1152_vm11, %v1180_v60 }
 0x308 PF: > { %s13_s12 = sadd.s32 1, %s1442_s12  }
 0x309   : > { %p10_p4 = scmp.ge.s32.totalorder %s13_s12, 4  }
 0x30b   :  { %12 = sbr.rel (!%p10_p4) target bundleno = 1 (0x1), region = 62 }

</bundles_post_ra>
